<compile_context>
chip_gen: v6e
topology: v6e:2x2x1
jax: 0.10.0
libtpu: 0.0.40
codegen_flags: <defaults>
</compile_context>

<pallas_src>
import math

import jax
import jax.numpy as jnp
from jax.experimental import pallas as pl
from jax.experimental.pallas import tpu as pltpu


_LANE_WIDTH = 1024                     # 8 vregs wide: lane-dense, unmasked vst
_TARGET_BLOCK_BYTES = 2 * 1024 * 1024  # 2 MiB/buffer -> 8 MiB in+out double-buffered (v5e-safe)
_SMALL_INPUT_ELEMS = 256 * 1024        # below this, plain fused XLA elementwise is faster


def _direct_kernel(x_ref, o_ref):
    # Elementwise on the VPU: deg -> rad, then shift by -pi.
    x = x_ref[...]
    deg2rad = jnp.asarray(math.pi / 180.0, dtype=x.dtype)
    pi = jnp.asarray(math.pi, dtype=x.dtype)
    o_ref[...] = (x * deg2rad - pi).astype(o_ref.dtype)


def _round_up(x: int, m: int) -> int:
    return (x + m - 1) // m * m


def direct_forward(coords: jax.Array) -> jax.Array:
    """Pallas equivalent of Direct.forward (elementwise deg2rad(x) - pi)."""
    # Match torch.deg2rad promotion: integer/bool inputs compute in float32.
    if not jnp.issubdtype(coords.dtype, jnp.floating):
        coords = coords.astype(jnp.float32)

    orig_shape = coords.shape
    dtype = coords.dtype
    n_elems = int(coords.size)

    deg2rad_c = jnp.asarray(math.pi / 180.0, dtype=dtype)
    pi_c = jnp.asarray(math.pi, dtype=dtype)

    # Small-input bypass: for tiny coordinate batches the Pallas launch and
    # wrapper reshapes are pure overhead vs. a fused XLA elementwise op.
    if n_elems < _SMALL_INPUT_ELEMS:
        return coords * deg2rad_c - pi_c

    width = _LANE_WIDTH
    rows = int(pl.cdiv(n_elems, width))

    # Dtype-aware block sizing: target ~2 MiB per buffer, rows multiple of 8.
    itemsize = jnp.dtype(dtype).itemsize
    max_block_rows = max(8, (_TARGET_BLOCK_BYTES // (width * itemsize)) // 8 * 8)

    if rows <= 2 * max_block_rows:
        # Always produce >= 2 grid programs so v7x megacore can split the work.
        block_rows = max(8, _round_up(int(pl.cdiv(rows, 2)), 8))
    else:
        block_rows = max_block_rows

    grid = (int(pl.cdiv(rows, block_rows)),)

    # Lane-dense slab: pad the flat vector only to the next multiple of the
    # lane width (<= 1023 elements); ragged final row-blocks are masked by
    # Pallas, so no padding to a multiple of block_rows is needed.
    flat = coords.reshape(-1)
    padded_len = rows * width
    needs_pad = padded_len != n_elems
    if needs_pad:
        flat = jnp.pad(flat, (0, padded_len - n_elems))
    slab = flat.reshape(rows, width)

    out_slab = pl.pallas_call(
        _direct_kernel,
        out_shape=jax.ShapeDtypeStruct((rows, width), dtype),
        grid=grid,
        in_specs=[pl.BlockSpec((block_rows, width), lambda i: (i, 0))],
        out_specs=pl.BlockSpec((block_rows, width), lambda i: (i, 0)),
        compiler_params=pltpu.CompilerParams(
            dimension_semantics=("parallel",),
            allow_input_fusion=[True],
        ),
    )(slab)

    if needs_pad:
        return out_slab.reshape(-1)[:n_elems].reshape(orig_shape)
    return out_slab.reshape(orig_shape)


if __name__ == "__main__":
    key = jax.random.PRNGKey(0)

    # 1) Small batch of (lon, lat) pairs in degrees (module's typical input);
    #    exercises the fused-XLA bypass path.
    coords_small = jax.random.uniform(
        key, (8, 2), dtype=jnp.float32, minval=-180.0, maxval=180.0
    )
    out_small = jax.block_until_ready(direct_forward(coords_small))
    ref_small = jnp.deg2rad(coords_small) - jnp.float32(math.pi)
    assert out_small.shape == coords_small.shape
    assert out_small.dtype == coords_small.dtype
    assert jnp.allclose(out_small, ref_small, atol=1e-5), "mismatch (8x2)"

    # 2) Large batch that takes the Pallas path with no pad/slice
    #    (262144 elems = exact multiple of the 1024-lane width).
    coords_big = jax.random.uniform(
        jax.random.PRNGKey(0), (131072, 2), dtype=jnp.float32,
        minval=-180.0, maxval=180.0,
    )
    out_big = jax.block_until_ready(direct_forward(coords_big))
    ref_big = jnp.deg2rad(coords_big) - jnp.float32(math.pi)
    assert out_big.shape == coords_big.shape
    assert jnp.allclose(out_big, ref_big, atol=1e-5), "mismatch (131072x2)"

    # 3) Large batch that is NOT a multiple of the lane width: exercises the
    #    minimal pad + ragged final block + post-slice path.
    coords_rag = jax.random.uniform(
        jax.random.PRNGKey(1), (150000, 2), dtype=jnp.float32,
        minval=-180.0, maxval=180.0,
    )
    out_rag = jax.block_until_ready(direct_forward(coords_rag))
    ref_rag = jnp.deg2rad(coords_rag) - jnp.float32(math.pi)
    assert out_rag.shape == coords_rag.shape
    assert jnp.allclose(out_rag, ref_rag, atol=1e-5), "mismatch (150000x2)"

    print("KERNEL_OK")
</pallas_src>

<mosaic_0001>
module attributes {stable_mosaic.version = 11 : i64} {
  func.func @_direct_kernel(%arg0: i32, %arg1: memref<128x1024xf32, #tpu.memory_space<vmem>>, %arg2: memref<128x1024xf32, #tpu.memory_space<vmem>>) attributes {dimension_semantics = [#tpu.dimension_semantics<parallel>], iteration_bounds = array<i64: 2>, scalar_prefetch = 0 : i64, scratch_operands = 0 : i64, tpu.core_type = #tpu.core_type<tc>, window_params = [{transform_indices = @transform_0, window_bounds = array<i64: 128, 1024>}, {transform_indices = @transform_1, window_bounds = array<i64: 128, 1024>}]} {
    %c0 = arith.constant 0 : index
    %c0_0 = arith.constant 0 : index
    %0 = vector.load %arg1[%c0, %c0_0] : memref<128x1024xf32, #tpu.memory_space<vmem>>, vector<128x1024xf32>
    %cst = arith.constant 0.0174532924 : f32
    %1 = vector.broadcast %cst : f32 to vector<128x1024xf32>
    %2 = arith.mulf %0, %1 : vector<128x1024xf32>
    %cst_1 = arith.constant 3.14159274 : f32
    %3 = vector.broadcast %cst_1 : f32 to vector<128x1024xf32>
    %4 = arith.subf %2, %3 : vector<128x1024xf32>
    %c0_2 = arith.constant 0 : index
    %c0_3 = arith.constant 0 : index
    %5 = vector.load %arg2[%c0_2, %c0_3] : memref<128x1024xf32, #tpu.memory_space<vmem>>, vector<128x1024xf32>
    tpu.vector_store %arg2[%c0_2, %c0_3], %4 {strides = array<i32>} : memref<128x1024xf32, #tpu.memory_space<vmem>>, vector<128x1024xf32>,
    return
  }
  func.func @transform_0(%arg0: i32) -> (i32, i32) {
    %c0_i32 = arith.constant 0 : i32
    %c0_i32_0 = arith.constant 0 : i32
    return %arg0, %c0_i32 : i32, i32
  }
  func.func @transform_1(%arg0: i32) -> (i32, i32) {
    %c0_i32 = arith.constant 0 : i32
    %c0_i32_0 = arith.constant 0 : i32
    return %arg0, %c0_i32 : i32, i32
  }
}

</mosaic_0001>

<bundles_post_ra>
// kernel: tpu_custom_call.1
= control target key start
LH: loop header
LB: loop body
LE: loop exit
PB: predicated region body
PF: predicated region fallthrough
CT: control target
= control target key end

     0   :  { %6 = vsyncpa [#allocation3], 0  ;;  %s1461_s0 = inlined_call_operand.hbm [shape: f32[256,1024], index: 0, kind: input, shape index: {}]   ;;  %s1462_s1 = inlined_call_operand.hbm [shape: f32[256,1024], index: 1, kind: output, shape index: {}]  }
   0x1   :  { %8 = vsyncpa [#allocation3 + $0x1], 0 }
   0x2   :  { %9 = vsyncpa [#allocation4], 0 }
   0x3   :  { %11 = vsyncpa [#allocation4 + $0x1], 0  ;;  %s1046_s6 = smov 0   ;;  %s1048_s7 = smov 0  }
   0x4   :  { %s1050_s8 = smov 0   ;;  %s1052_s9 = smov 0  }
   0x5 LB: > { %s1067_s10 = sadd.s32 4294967295, %s1028_s9   ;;  %s738_s11 = sadd.s32 4294967294, %s1028_s9   ;;  %s1028_s9 = sphi %s1052_s9, %s1477_s9   ;;  %s1024_s8 = sphi %s1050_s8, %s1476_s8   ;;  %s1020_s7 = sphi %s1048_s7, %s1475_s7   ;;  %s1016_s6 = sphi %s1046_s6, %s1474_s6  }
   0x6   : > { %s1071_s12 = sadd.s32 1, %s1028_s9   ;;  %s24_s13 = sadd.s32 1, %s1024_s8 }
   0x7   : > { %s21_s14 = ssub.s32 %s1028_s9, %s1071_s12  ;;  %p31_p0 = scmp.ne.s32.totalorder %s1024_s8, %s1020_s7 }
   0x8   : > { %p22_p1 = scmp.eq.s32.totalorder %s21_s14, 0  ;;  %p32_p2 = scmp.eq.s32.totalorder %s1028_s9, 0 }
   0x9   : > { %p37_p3 = scmp.ne.s32.totalorder %s1020_s7, %s1016_s6  ;;  %p38_p4 = scmp.eq.s32.totalorder %s1067_s10, 0 }
   0xa   : > { %s1083_s15 = scalar_select %p22_p1, %s1024_s8, %s24_s13  }
   0xb   : > { %p1085_p5 = por %p32_p2, %p31_p0  ;;  %p1089_p6 = por %p38_p4, %p37_p3 }
   0xc   : > { %p61_p7 = scmp.eq.s32.totalorder %s1067_s10, 1  ;;  %p67_p8 = scmp.eq.s32.totalorder %s738_s11, 1 }
   0xd   : > { %s1466_s17 = scalar_select %p1089_p6, 1, 0 }
   0xe   : > { %p898_p10 = scmp.lt.s32.totalorder %s1028_s9, 2  ;;  %p1096_p11 = por %p61_p7, %p31_p0 }
   0xf   : > { %p1100_p12 = por %p67_p8, %p37_p3  ;;  %s87_s20 = sand.u32 1, %s1024_s8  }
  0x10   : > { %s1467_s18 = scalar_select %p1096_p11, 1, 0 }
  0x11   : > { %s1468_s19 = scalar_select %p1100_p12, 1, 0 }
  0x12   : > { %s883_s21 = sshll.u32 %s1028_s9, 14  ;;  %s741_s22 = sshll.u32 %s87_s20, 10 }
  0x13   : > { %s1109_s25 = scalar_lea.hbm %s1461_s0, %s883_s21  ;;  %s91_s26 = scalar_lea.vmem [#allocation2], %s741_s22 }
  0x14   : > { %s99_s27 = sshll.u32 %s91_s26, 4  ;;  %p1113_p13 = pnand %p898_p10, %p1085_p5  ;;  %s1117_s27 = int_to_ptr.vmem [resolvable:$true] %s99_s27 }
  0x15   : > { %s1119_s29 = scalar_lea.sflag [#allocation3], %s87_s20  ;;  %s936_s30 = scalar_lea.hbm %s1109_s25, 16384 }
  0x16   : > { %p937_p0 = scmp.ne.s32.totalorder %s1109_s25, %s936_s30  ;;  %p938_p1 = pneg %p1113_p13 }
  0x17   : > { %s941_s4 = scalar_lea.hbm %s1461_s0, 32768  ;;  %p942_p4 = scmp.lt.s32.totalorder %s1109_s25, %s1461_s0 }
  0x18   : > { %p939_p2 = pnand %p938_p1, %p937_p0  ;;  %p943_p5 = scmp.lt.s32.totalorder %s941_s4, %s936_s30 }
  0x1a   : > { %p940_p3 = pneg %p939_p2  ;;  %p944_p7 = por %p943_p5, %p942_p4 }
  0x1c   : > { %p945_p8 = pnand %p944_p7, %p940_p3 }
  0x1e   : > { %948 = shalt.err (!%p945_p8)
}
  0x1f   : > { %s949_s13 = scalar_lea.vmem %s1117_s27, 16384  ;;  %s1030_s14 = smov [#allocation2]  }
  0x20   : > { %p950_p10 = scmp.ne.s32.totalorder %s1117_s27, %s949_s13  ;;  %s954_s16 = sshll.u32 %s1030_s14, 4  ;;  %s955_s16 = int_to_ptr.vmem [resolvable:$false] %s954_s16 }
  0x21   : > { %s956_s20 = scalar_lea.vmem %s955_s16, 32768  ;;  %p957_p2 = scmp.lt.s32.totalorder %s1117_s27, %s955_s16 }
  0x22   : > { %p952_p9 = pnand %p950_p10, %p938_p1  ;;  %p958_p12 = scmp.lt.s32.totalorder %s956_s20, %s949_s13 }
  0x24   : > { %p953_p0 = pneg %p952_p9  ;;  %p959_p11 = por %p958_p12, %p957_p2 }
  0x26   : > { %p960_p6 = pnand %p959_p11, %p953_p0 }
  0x28   : > { %963 = shalt.err (!%p960_p6)
}
  0x29   : > { %s1031_s21 = smov 1024   ;;  %s1032_s22 = smov 64  }
  0x2a   : > { %893 = dma.hbm_to_vmem [thread:$0]  (!%p1113_p13), %s1109_s25, 16384, %s1117_s27, %s1119_s29, %s1031_s21, %s1031_s21, %s1032_s22  }
  0x2b   : > { %p745_p9 = scmp.ge.s32.totalorder %s1028_s9, 1  ;;  %p107_p1 = scmp.lt.s32.totalorder %s1028_s9, 3 }
  0x2d   : > { %p108_p3 = pnand %p745_p9, %p107_p1 }
  0x2e   : > { %s1143_s23 = sand.u32 (!%p108_p3), 1, %s1020_s7   ;;  %p1470_p6 = scmp.ne.s32.totalorder (!%p108_p3), %s1466_s17, 0 }
  0x2f   : > { %111 = sbr.rel (%p108_p3) target bundleno = 203 (0xcb), region = 24  ;;  %s746_s24 = sshll.u32 (!%p108_p3), %s1143_s23, 10 }
  0x30   : > { %s114_s26 = scalar_lea.sflag (!%p108_p3), [#allocation3], %s1143_s23  ;;  %s1147_s30 = scalar_lea.vmem (!%p108_p3), [#allocation2], %s746_s24 }
  0x34   : > { %1007 = dma.done.wait (%p1470_p6), %s114_s26, 16384  }
  0x35   : > { %1009 = vsyncadd (%p1470_p6), %s114_s26, 4294950912  ;;  %v138_v0 = vld [vmem:[%s1147_s30] sm:$0xff]  ;;  %v139_v1 = vld [vmem:[%s1147_s30 + $0x8] sm:$0xff]  ;;  %s1159_s17 = scalar_lea.vmem [#allocation5], %s746_s24  ;;  %s885_s25 = sshll.u32 %s1067_s10, 14 }
  0x36   : > { %v140_v2 = vld [vmem:[%s1147_s30 + $0x10] sm:$0xff]  ;;  %v266_v3 = vmul.f32 0.017453292, %v138_v0  ;;  %v267_v4 = vmul.f32 0.017453292, %v139_v1  ;;  %v141_v6 = vld [vmem:[%s1147_s30 + $0x18] sm:$0xff]  ;;  %s1411_s29 = scalar_lea.hbm %s1462_s1, %s885_s25 }
  0x37   : > { %v268_v5 = vmul.f32 0.017453292, %v140_v2  ;;  %v142_v7 = vld [vmem:[%s1147_s30 + $0x20] sm:$0xff]  ;;  %v143_v8 = vld [vmem:[%s1147_s30 + $0x28] sm:$0xff]  ;;  %v269_v12 = vmul.f32 0.017453292, %v141_v6 }
  0x38   : > { %v748_v9 = vadd.f32 -3.1415927, %v266_v3  ;;  %v749_v10 = vadd.f32 -3.1415927, %v267_v4  ;;  %v270_v13 = vmul.f32 0.017453292, %v142_v7 }
  0x39   : > { %v750_v11 = vadd.f32 -3.1415927, %v268_v5  ;;  %v271_v14 = vmul.f32 0.017453292, %v143_v8  ;;  %v144_v15 = vld [vmem:[%s1147_s30 + $0x30] sm:$0xff]  ;;  %v145_v16 = vld [vmem:[%s1147_s30 + $0x38] sm:$0xff] }
  0x3a   : > { %522 = vst [vmem:[%s1159_s17] sm:$0xff] %v748_v9  ;;  %523 = vst [vmem:[%s1159_s17 + $0x8] sm:$0xff] %v749_v10  ;;  %v146_v17 = vld [vmem:[%s1147_s30 + $0x40] sm:$0xff]  ;;  %v751_v18 = vadd.f32 -3.1415927, %v269_v12  ;;  %v752_v19 = vadd.f32 -3.1415927, %v270_v13 }
  0x3b   : > { %524 = vst [vmem:[%s1159_s17 + $0x10] sm:$0xff] %v750_v11  ;;  %v753_v20 = vadd.f32 -3.1415927, %v271_v14  ;;  %v272_v21 = vmul.f32 0.017453292, %v144_v15  ;;  %v147_v24 = vld [vmem:[%s1147_s30 + $0x48] sm:$0xff] }
  0x3c   : > { %v273_v22 = vmul.f32 0.017453292, %v145_v16  ;;  %v274_v23 = vmul.f32 0.017453292, %v146_v17  ;;  %525 = vst [vmem:[%s1159_s17 + $0x18] sm:$0xff] %v751_v18  ;;  %526 = vst [vmem:[%s1159_s17 + $0x20] sm:$0xff] %v752_v19 }
  0x3d   : > { %527 = vst [vmem:[%s1159_s17 + $0x28] sm:$0xff] %v753_v20  ;;  %v148_v25 = vld [vmem:[%s1147_s30 + $0x50] sm:$0xff]  ;;  %v149_v26 = vld [vmem:[%s1147_s30 + $0x58] sm:$0xff]  ;;  %v754_v27 = vadd.f32 -3.1415927, %v272_v21  ;;  %v150_v33 = vld [vmem:[%s1147_s30 + $0x60] sm:$0xff] }
  0x3e   : > { %v755_v28 = vadd.f32 -3.1415927, %v273_v22  ;;  %v756_v29 = vadd.f32 -3.1415927, %v274_v23  ;;  %v275_v30 = vmul.f32 0.017453292, %v147_v24 }
  0x3f   : > { %v276_v31 = vmul.f32 0.017453292, %v148_v25  ;;  %v277_v32 = vmul.f32 0.017453292, %v149_v26  ;;  %528 = vst [vmem:[%s1159_s17 + $0x30] sm:$0xff] %v754_v27  ;;  %v151_v34 = vld [vmem:[%s1147_s30 + $0x68] sm:$0xff] }
  0x40   : > { %529 = vst [vmem:[%s1159_s17 + $0x38] sm:$0xff] %v755_v28  ;;  %530 = vst [vmem:[%s1159_s17 + $0x40] sm:$0xff] %v756_v29  ;;  %v152_v35 = vld [vmem:[%s1147_s30 + $0x70] sm:$0xff]  ;;  %v757_v36 = vadd.f32 -3.1415927, %v275_v30  ;;  %v153_v42 = vld [vmem:[%s1147_s30 + $0x78] sm:$0xff] }
  0x41   : > { %v758_v37 = vadd.f32 -3.1415927, %v276_v31  ;;  %v759_v38 = vadd.f32 -3.1415927, %v277_v32  ;;  %v278_v39 = vmul.f32 0.017453292, %v150_v33 }
  0x42   : > { %v279_v40 = vmul.f32 0.017453292, %v151_v34  ;;  %v280_v41 = vmul.f32 0.017453292, %v152_v35  ;;  %531 = vst [vmem:[%s1159_s17 + $0x48] sm:$0xff] %v757_v36  ;;  %v154_v43 = vld [vmem:[%s1147_s30 + $0x80] sm:$0xff] }
  0x43   : > { %532 = vst [vmem:[%s1159_s17 + $0x50] sm:$0xff] %v758_v37  ;;  %533 = vst [vmem:[%s1159_s17 + $0x58] sm:$0xff] %v759_v38  ;;  %v155_v44 = vld [vmem:[%s1147_s30 + $0x88] sm:$0xff]  ;;  %v760_v45 = vadd.f32 -3.1415927, %v278_v39  ;;  %v156_v51 = vld [vmem:[%s1147_s30 + $0x90] sm:$0xff] }
  0x44   : > { %v761_v46 = vadd.f32 -3.1415927, %v279_v40  ;;  %v762_v47 = vadd.f32 -3.1415927, %v280_v41  ;;  %v281_v48 = vmul.f32 0.017453292, %v153_v42 }
  0x45   : > { %v282_v49 = vmul.f32 0.017453292, %v154_v43  ;;  %v283_v50 = vmul.f32 0.017453292, %v155_v44  ;;  %534 = vst [vmem:[%s1159_s17 + $0x60] sm:$0xff] %v760_v45  ;;  %v157_v52 = vld [vmem:[%s1147_s30 + $0x98] sm:$0xff] }
  0x46   : > { %535 = vst [vmem:[%s1159_s17 + $0x68] sm:$0xff] %v761_v46  ;;  %536 = vst [vmem:[%s1159_s17 + $0x70] sm:$0xff] %v762_v47  ;;  %v158_v53 = vld [vmem:[%s1147_s30 + $0xa0] sm:$0xff]  ;;  %v763_v54 = vadd.f32 -3.1415927, %v281_v48  ;;  %v159_v60 = vld [vmem:[%s1147_s30 + $0xa8] sm:$0xff] }
  0x47   : > { %v764_v55 = vadd.f32 -3.1415927, %v282_v49  ;;  %v765_v56 = vadd.f32 -3.1415927, %v283_v50  ;;  %v284_v57 = vmul.f32 0.017453292, %v156_v51 }
  0x48   : > { %v285_v58 = vmul.f32 0.017453292, %v157_v52  ;;  %v286_v59 = vmul.f32 0.017453292, %v158_v53  ;;  %537 = vst [vmem:[%s1159_s17 + $0x78] sm:$0xff] %v763_v54  ;;  %v160_v61 = vld [vmem:[%s1147_s30 + $0xb0] sm:$0xff] }
  0x49   : > { %538 = vst [vmem:[%s1159_s17 + $0x80] sm:$0xff] %v764_v55  ;;  %539 = vst [vmem:[%s1159_s17 + $0x88] sm:$0xff] %v765_v56  ;;  %v161_v62 = vld [vmem:[%s1147_s30 + $0xb8] sm:$0xff]  ;;  %v766_v63 = vadd.f32 -3.1415927, %v284_v57  ;;  %v162_v5 = vld [vmem:[%s1147_s30 + $0xc0] sm:$0xff] }
  0x4a   : > { %v767_v0 = vadd.f32 -3.1415927, %v285_v58  ;;  %v768_v1 = vadd.f32 -3.1415927, %v286_v59  ;;  %v287_v2 = vmul.f32 0.017453292, %v159_v60 }
  0x4b   : > { %v288_v3 = vmul.f32 0.017453292, %v160_v61  ;;  %v289_v4 = vmul.f32 0.017453292, %v161_v62  ;;  %540 = vst [vmem:[%s1159_s17 + $0x90] sm:$0xff] %v766_v63  ;;  %v163_v6 = vld [vmem:[%s1147_s30 + $0xc8] sm:$0xff] }
  0x4c   : > { %541 = vst [vmem:[%s1159_s17 + $0x98] sm:$0xff] %v767_v0  ;;  %542 = vst [vmem:[%s1159_s17 + $0xa0] sm:$0xff] %v768_v1  ;;  %v164_v7 = vld [vmem:[%s1147_s30 + $0xd0] sm:$0xff]  ;;  %v769_v8 = vadd.f32 -3.1415927, %v287_v2  ;;  %v165_v14 = vld [vmem:[%s1147_s30 + $0xd8] sm:$0xff] }
  0x4d   : > { %v770_v9 = vadd.f32 -3.1415927, %v288_v3  ;;  %v771_v10 = vadd.f32 -3.1415927, %v289_v4  ;;  %v290_v11 = vmul.f32 0.017453292, %v162_v5 }
  0x4e   : > { %v291_v12 = vmul.f32 0.017453292, %v163_v6  ;;  %v292_v13 = vmul.f32 0.017453292, %v164_v7  ;;  %543 = vst [vmem:[%s1159_s17 + $0xa8] sm:$0xff] %v769_v8  ;;  %v166_v15 = vld [vmem:[%s1147_s30 + $0xe0] sm:$0xff] }
  0x4f   : > { %544 = vst [vmem:[%s1159_s17 + $0xb0] sm:$0xff] %v770_v9  ;;  %545 = vst [vmem:[%s1159_s17 + $0xb8] sm:$0xff] %v771_v10  ;;  %v167_v16 = vld [vmem:[%s1147_s30 + $0xe8] sm:$0xff]  ;;  %v772_v17 = vadd.f32 -3.1415927, %v290_v11  ;;  %v168_v23 = vld [vmem:[%s1147_s30 + $0xf0] sm:$0xff] }
  0x50   : > { %v773_v18 = vadd.f32 -3.1415927, %v291_v12  ;;  %v774_v19 = vadd.f32 -3.1415927, %v292_v13  ;;  %v293_v20 = vmul.f32 0.017453292, %v165_v14 }
  0x51   : > { %v294_v21 = vmul.f32 0.017453292, %v166_v15  ;;  %v295_v22 = vmul.f32 0.017453292, %v167_v16  ;;  %546 = vst [vmem:[%s1159_s17 + $0xc0] sm:$0xff] %v772_v17  ;;  %v169_v24 = vld [vmem:[%s1147_s30 + $0xf8] sm:$0xff] }
  0x52   : > { %547 = vst [vmem:[%s1159_s17 + $0xc8] sm:$0xff] %v773_v18  ;;  %548 = vst [vmem:[%s1159_s17 + $0xd0] sm:$0xff] %v774_v19  ;;  %v170_v25 = vld [vmem:[%s1147_s30 + $0x100] sm:$0xff]  ;;  %v775_v26 = vadd.f32 -3.1415927, %v293_v20  ;;  %v171_v32 = vld [vmem:[%s1147_s30 + $0x108] sm:$0xff] }
  0x53   : > { %v776_v27 = vadd.f32 -3.1415927, %v294_v21  ;;  %v777_v28 = vadd.f32 -3.1415927, %v295_v22  ;;  %v296_v29 = vmul.f32 0.017453292, %v168_v23 }
  0x54   : > { %v297_v30 = vmul.f32 0.017453292, %v169_v24  ;;  %v298_v31 = vmul.f32 0.017453292, %v170_v25  ;;  %549 = vst [vmem:[%s1159_s17 + $0xd8] sm:$0xff] %v775_v26  ;;  %v172_v33 = vld [vmem:[%s1147_s30 + $0x110] sm:$0xff] }
  0x55   : > { %550 = vst [vmem:[%s1159_s17 + $0xe0] sm:$0xff] %v776_v27  ;;  %551 = vst [vmem:[%s1159_s17 + $0xe8] sm:$0xff] %v777_v28  ;;  %v173_v34 = vld [vmem:[%s1147_s30 + $0x118] sm:$0xff]  ;;  %v778_v35 = vadd.f32 -3.1415927, %v296_v29  ;;  %v174_v41 = vld [vmem:[%s1147_s30 + $0x120] sm:$0xff] }
  0x56   : > { %v779_v36 = vadd.f32 -3.1415927, %v297_v30  ;;  %v780_v37 = vadd.f32 -3.1415927, %v298_v31  ;;  %v299_v38 = vmul.f32 0.017453292, %v171_v32 }
  0x57   : > { %v300_v39 = vmul.f32 0.017453292, %v172_v33  ;;  %v301_v40 = vmul.f32 0.017453292, %v173_v34  ;;  %552 = vst [vmem:[%s1159_s17 + $0xf0] sm:$0xff] %v778_v35  ;;  %v175_v42 = vld [vmem:[%s1147_s30 + $0x128] sm:$0xff] }
  0x58   : > { %553 = vst [vmem:[%s1159_s17 + $0xf8] sm:$0xff] %v779_v36  ;;  %554 = vst [vmem:[%s1159_s17 + $0x100] sm:$0xff] %v780_v37  ;;  %v176_v43 = vld [vmem:[%s1147_s30 + $0x130] sm:$0xff]  ;;  %v781_v44 = vadd.f32 -3.1415927, %v299_v38  ;;  %v177_v50 = vld [vmem:[%s1147_s30 + $0x138] sm:$0xff] }
  0x59   : > { %v782_v45 = vadd.f32 -3.1415927, %v300_v39  ;;  %v783_v46 = vadd.f32 -3.1415927, %v301_v40  ;;  %v302_v47 = vmul.f32 0.017453292, %v174_v41 }
  0x5a   : > { %v303_v48 = vmul.f32 0.017453292, %v175_v42  ;;  %v304_v49 = vmul.f32 0.017453292, %v176_v43  ;;  %555 = vst [vmem:[%s1159_s17 + $0x108] sm:$0xff] %v781_v44  ;;  %v178_v51 = vld [vmem:[%s1147_s30 + $0x140] sm:$0xff] }
  0x5b   : > { %556 = vst [vmem:[%s1159_s17 + $0x110] sm:$0xff] %v782_v45  ;;  %557 = vst [vmem:[%s1159_s17 + $0x118] sm:$0xff] %v783_v46  ;;  %v179_v52 = vld [vmem:[%s1147_s30 + $0x148] sm:$0xff]  ;;  %v784_v53 = vadd.f32 -3.1415927, %v302_v47  ;;  %v180_v59 = vld [vmem:[%s1147_s30 + $0x150] sm:$0xff] }
  0x5c   : > { %v785_v54 = vadd.f32 -3.1415927, %v303_v48  ;;  %v786_v55 = vadd.f32 -3.1415927, %v304_v49  ;;  %v305_v56 = vmul.f32 0.017453292, %v177_v50 }
  0x5d   : > { %v306_v57 = vmul.f32 0.017453292, %v178_v51  ;;  %v307_v58 = vmul.f32 0.017453292, %v179_v52  ;;  %558 = vst [vmem:[%s1159_s17 + $0x120] sm:$0xff] %v784_v53  ;;  %v181_v60 = vld [vmem:[%s1147_s30 + $0x158] sm:$0xff] }
  0x5e   : > { %559 = vst [vmem:[%s1159_s17 + $0x128] sm:$0xff] %v785_v54  ;;  %560 = vst [vmem:[%s1159_s17 + $0x130] sm:$0xff] %v786_v55  ;;  %v182_v61 = vld [vmem:[%s1147_s30 + $0x160] sm:$0xff]  ;;  %v787_v62 = vadd.f32 -3.1415927, %v305_v56  ;;  %v183_v4 = vld [vmem:[%s1147_s30 + $0x168] sm:$0xff] }
  0x5f   : > { %v788_v63 = vadd.f32 -3.1415927, %v306_v57  ;;  %v789_v0 = vadd.f32 -3.1415927, %v307_v58  ;;  %v308_v1 = vmul.f32 0.017453292, %v180_v59 }
  0x60   : > { %v309_v2 = vmul.f32 0.017453292, %v181_v60  ;;  %v310_v3 = vmul.f32 0.017453292, %v182_v61  ;;  %561 = vst [vmem:[%s1159_s17 + $0x138] sm:$0xff] %v787_v62  ;;  %v184_v5 = vld [vmem:[%s1147_s30 + $0x170] sm:$0xff] }
  0x61   : > { %562 = vst [vmem:[%s1159_s17 + $0x140] sm:$0xff] %v788_v63  ;;  %563 = vst [vmem:[%s1159_s17 + $0x148] sm:$0xff] %v789_v0  ;;  %v185_v6 = vld [vmem:[%s1147_s30 + $0x178] sm:$0xff]  ;;  %v790_v7 = vadd.f32 -3.1415927, %v308_v1  ;;  %v186_v13 = vld [vmem:[%s1147_s30 + $0x180] sm:$0xff] }
  0x62   : > { %v791_v8 = vadd.f32 -3.1415927, %v309_v2  ;;  %v792_v9 = vadd.f32 -3.1415927, %v310_v3  ;;  %v311_v10 = vmul.f32 0.017453292, %v183_v4 }
  0x63   : > { %v312_v11 = vmul.f32 0.017453292, %v184_v5  ;;  %v313_v12 = vmul.f32 0.017453292, %v185_v6  ;;  %564 = vst [vmem:[%s1159_s17 + $0x150] sm:$0xff] %v790_v7  ;;  %v187_v14 = vld [vmem:[%s1147_s30 + $0x188] sm:$0xff] }
  0x64   : > { %565 = vst [vmem:[%s1159_s17 + $0x158] sm:$0xff] %v791_v8  ;;  %566 = vst [vmem:[%s1159_s17 + $0x160] sm:$0xff] %v792_v9  ;;  %v188_v15 = vld [vmem:[%s1147_s30 + $0x190] sm:$0xff]  ;;  %v793_v16 = vadd.f32 -3.1415927, %v311_v10  ;;  %v189_v22 = vld [vmem:[%s1147_s30 + $0x198] sm:$0xff] }
  0x65   : > { %v794_v17 = vadd.f32 -3.1415927, %v312_v11  ;;  %v795_v18 = vadd.f32 -3.1415927, %v313_v12  ;;  %v314_v19 = vmul.f32 0.017453292, %v186_v13 }
  0x66   : > { %v315_v20 = vmul.f32 0.017453292, %v187_v14  ;;  %v316_v21 = vmul.f32 0.017453292, %v188_v15  ;;  %567 = vst [vmem:[%s1159_s17 + $0x168] sm:$0xff] %v793_v16  ;;  %v190_v23 = vld [vmem:[%s1147_s30 + $0x1a0] sm:$0xff] }
  0x67   : > { %568 = vst [vmem:[%s1159_s17 + $0x170] sm:$0xff] %v794_v17  ;;  %569 = vst [vmem:[%s1159_s17 + $0x178] sm:$0xff] %v795_v18  ;;  %v191_v24 = vld [vmem:[%s1147_s30 + $0x1a8] sm:$0xff]  ;;  %v796_v25 = vadd.f32 -3.1415927, %v314_v19  ;;  %v192_v31 = vld [vmem:[%s1147_s30 + $0x1b0] sm:$0xff] }
  0x68   : > { %v797_v26 = vadd.f32 -3.1415927, %v315_v20  ;;  %v798_v27 = vadd.f32 -3.1415927, %v316_v21  ;;  %v317_v28 = vmul.f32 0.017453292, %v189_v22 }
  0x69   : > { %v318_v29 = vmul.f32 0.017453292, %v190_v23  ;;  %v319_v30 = vmul.f32 0.017453292, %v191_v24  ;;  %570 = vst [vmem:[%s1159_s17 + $0x180] sm:$0xff] %v796_v25  ;;  %v193_v32 = vld [vmem:[%s1147_s30 + $0x1b8] sm:$0xff] }
  0x6a   : > { %571 = vst [vmem:[%s1159_s17 + $0x188] sm:$0xff] %v797_v26  ;;  %572 = vst [vmem:[%s1159_s17 + $0x190] sm:$0xff] %v798_v27  ;;  %v194_v33 = vld [vmem:[%s1147_s30 + $0x1c0] sm:$0xff]  ;;  %v799_v34 = vadd.f32 -3.1415927, %v317_v28  ;;  %v195_v40 = vld [vmem:[%s1147_s30 + $0x1c8] sm:$0xff] }
  0x6b   : > { %v800_v35 = vadd.f32 -3.1415927, %v318_v29  ;;  %v801_v36 = vadd.f32 -3.1415927, %v319_v30  ;;  %v320_v37 = vmul.f32 0.017453292, %v192_v31 }
  0x6c   : > { %v321_v38 = vmul.f32 0.017453292, %v193_v32  ;;  %v322_v39 = vmul.f32 0.017453292, %v194_v33  ;;  %573 = vst [vmem:[%s1159_s17 + $0x198] sm:$0xff] %v799_v34  ;;  %v196_v41 = vld [vmem:[%s1147_s30 + $0x1d0] sm:$0xff] }
  0x6d   : > { %574 = vst [vmem:[%s1159_s17 + $0x1a0] sm:$0xff] %v800_v35  ;;  %575 = vst [vmem:[%s1159_s17 + $0x1a8] sm:$0xff] %v801_v36  ;;  %v197_v42 = vld [vmem:[%s1147_s30 + $0x1d8] sm:$0xff]  ;;  %v802_v43 = vadd.f32 -3.1415927, %v320_v37  ;;  %v198_v49 = vld [vmem:[%s1147_s30 + $0x1e0] sm:$0xff] }
  0x6e   : > { %v803_v44 = vadd.f32 -3.1415927, %v321_v38  ;;  %v804_v45 = vadd.f32 -3.1415927, %v322_v39  ;;  %v323_v46 = vmul.f32 0.017453292, %v195_v40 }
  0x6f   : > { %v324_v47 = vmul.f32 0.017453292, %v196_v41  ;;  %v325_v48 = vmul.f32 0.017453292, %v197_v42  ;;  %576 = vst [vmem:[%s1159_s17 + $0x1b0] sm:$0xff] %v802_v43  ;;  %v199_v50 = vld [vmem:[%s1147_s30 + $0x1e8] sm:$0xff] }
  0x70   : > { %577 = vst [vmem:[%s1159_s17 + $0x1b8] sm:$0xff] %v803_v44  ;;  %578 = vst [vmem:[%s1159_s17 + $0x1c0] sm:$0xff] %v804_v45  ;;  %v200_v51 = vld [vmem:[%s1147_s30 + $0x1f0] sm:$0xff]  ;;  %v805_v52 = vadd.f32 -3.1415927, %v323_v46  ;;  %v201_v58 = vld [vmem:[%s1147_s30 + $0x1f8] sm:$0xff] }
  0x71   : > { %v806_v53 = vadd.f32 -3.1415927, %v324_v47  ;;  %v807_v54 = vadd.f32 -3.1415927, %v325_v48  ;;  %v326_v55 = vmul.f32 0.017453292, %v198_v49 }
  0x72   : > { %v327_v56 = vmul.f32 0.017453292, %v199_v50  ;;  %v328_v57 = vmul.f32 0.017453292, %v200_v51  ;;  %579 = vst [vmem:[%s1159_s17 + $0x1c8] sm:$0xff] %v805_v52  ;;  %v202_v59 = vld [vmem:[%s1147_s30 + $0x200] sm:$0xff] }
  0x73   : > { %580 = vst [vmem:[%s1159_s17 + $0x1d0] sm:$0xff] %v806_v53  ;;  %581 = vst [vmem:[%s1159_s17 + $0x1d8] sm:$0xff] %v807_v54  ;;  %v203_v60 = vld [vmem:[%s1147_s30 + $0x208] sm:$0xff]  ;;  %v808_v61 = vadd.f32 -3.1415927, %v326_v55  ;;  %v204_v3 = vld [vmem:[%s1147_s30 + $0x210] sm:$0xff] }
  0x74   : > { %v809_v62 = vadd.f32 -3.1415927, %v327_v56  ;;  %v810_v63 = vadd.f32 -3.1415927, %v328_v57  ;;  %v329_v0 = vmul.f32 0.017453292, %v201_v58 }
  0x75   : > { %v330_v1 = vmul.f32 0.017453292, %v202_v59  ;;  %v331_v2 = vmul.f32 0.017453292, %v203_v60  ;;  %582 = vst [vmem:[%s1159_s17 + $0x1e0] sm:$0xff] %v808_v61  ;;  %v205_v4 = vld [vmem:[%s1147_s30 + $0x218] sm:$0xff] }
  0x76   : > { %583 = vst [vmem:[%s1159_s17 + $0x1e8] sm:$0xff] %v809_v62  ;;  %584 = vst [vmem:[%s1159_s17 + $0x1f0] sm:$0xff] %v810_v63  ;;  %v206_v5 = vld [vmem:[%s1147_s30 + $0x220] sm:$0xff]  ;;  %v811_v6 = vadd.f32 -3.1415927, %v329_v0  ;;  %v207_v12 = vld [vmem:[%s1147_s30 + $0x228] sm:$0xff] }
  0x77   : > { %v812_v7 = vadd.f32 -3.1415927, %v330_v1  ;;  %v813_v8 = vadd.f32 -3.1415927, %v331_v2  ;;  %v332_v9 = vmul.f32 0.017453292, %v204_v3 }
  0x78   : > { %v333_v10 = vmul.f32 0.017453292, %v205_v4  ;;  %v334_v11 = vmul.f32 0.017453292, %v206_v5  ;;  %585 = vst [vmem:[%s1159_s17 + $0x1f8] sm:$0xff] %v811_v6  ;;  %v208_v13 = vld [vmem:[%s1147_s30 + $0x230] sm:$0xff] }
  0x79   : > { %586 = vst [vmem:[%s1159_s17 + $0x200] sm:$0xff] %v812_v7  ;;  %587 = vst [vmem:[%s1159_s17 + $0x208] sm:$0xff] %v813_v8  ;;  %v209_v14 = vld [vmem:[%s1147_s30 + $0x238] sm:$0xff]  ;;  %v814_v15 = vadd.f32 -3.1415927, %v332_v9  ;;  %v210_v21 = vld [vmem:[%s1147_s30 + $0x240] sm:$0xff] }
  0x7a   : > { %v815_v16 = vadd.f32 -3.1415927, %v333_v10  ;;  %v816_v17 = vadd.f32 -3.1415927, %v334_v11  ;;  %v335_v18 = vmul.f32 0.017453292, %v207_v12 }
  0x7b   : > { %v336_v19 = vmul.f32 0.017453292, %v208_v13  ;;  %v337_v20 = vmul.f32 0.017453292, %v209_v14  ;;  %588 = vst [vmem:[%s1159_s17 + $0x210] sm:$0xff] %v814_v15  ;;  %v211_v22 = vld [vmem:[%s1147_s30 + $0x248] sm:$0xff] }
  0x7c   : > { %589 = vst [vmem:[%s1159_s17 + $0x218] sm:$0xff] %v815_v16  ;;  %590 = vst [vmem:[%s1159_s17 + $0x220] sm:$0xff] %v816_v17  ;;  %v212_v23 = vld [vmem:[%s1147_s30 + $0x250] sm:$0xff]  ;;  %v817_v24 = vadd.f32 -3.1415927, %v335_v18  ;;  %v213_v30 = vld [vmem:[%s1147_s30 + $0x258] sm:$0xff] }
  0x7d   : > { %v818_v25 = vadd.f32 -3.1415927, %v336_v19  ;;  %v819_v26 = vadd.f32 -3.1415927, %v337_v20  ;;  %v338_v27 = vmul.f32 0.017453292, %v210_v21 }
  0x7e   : > { %v339_v28 = vmul.f32 0.017453292, %v211_v22  ;;  %v340_v29 = vmul.f32 0.017453292, %v212_v23  ;;  %591 = vst [vmem:[%s1159_s17 + $0x228] sm:$0xff] %v817_v24  ;;  %v214_v31 = vld [vmem:[%s1147_s30 + $0x260] sm:$0xff] }
  0x7f   : > { %592 = vst [vmem:[%s1159_s17 + $0x230] sm:$0xff] %v818_v25  ;;  %593 = vst [vmem:[%s1159_s17 + $0x238] sm:$0xff] %v819_v26  ;;  %v215_v32 = vld [vmem:[%s1147_s30 + $0x268] sm:$0xff]  ;;  %v820_v33 = vadd.f32 -3.1415927, %v338_v27  ;;  %v216_v39 = vld [vmem:[%s1147_s30 + $0x270] sm:$0xff] }
  0x80   : > { %v821_v34 = vadd.f32 -3.1415927, %v339_v28  ;;  %v822_v35 = vadd.f32 -3.1415927, %v340_v29  ;;  %v341_v36 = vmul.f32 0.017453292, %v213_v30 }
  0x81   : > { %v342_v37 = vmul.f32 0.017453292, %v214_v31  ;;  %v343_v38 = vmul.f32 0.017453292, %v215_v32  ;;  %594 = vst [vmem:[%s1159_s17 + $0x240] sm:$0xff] %v820_v33  ;;  %v217_v40 = vld [vmem:[%s1147_s30 + $0x278] sm:$0xff] }
  0x82   : > { %595 = vst [vmem:[%s1159_s17 + $0x248] sm:$0xff] %v821_v34  ;;  %596 = vst [vmem:[%s1159_s17 + $0x250] sm:$0xff] %v822_v35  ;;  %v218_v41 = vld [vmem:[%s1147_s30 + $0x280] sm:$0xff]  ;;  %v823_v42 = vadd.f32 -3.1415927, %v341_v36  ;;  %v219_v48 = vld [vmem:[%s1147_s30 + $0x288] sm:$0xff] }
  0x83   : > { %v824_v43 = vadd.f32 -3.1415927, %v342_v37  ;;  %v825_v44 = vadd.f32 -3.1415927, %v343_v38  ;;  %v344_v45 = vmul.f32 0.017453292, %v216_v39 }
  0x84   : > { %v345_v46 = vmul.f32 0.017453292, %v217_v40  ;;  %v346_v47 = vmul.f32 0.017453292, %v218_v41  ;;  %597 = vst [vmem:[%s1159_s17 + $0x258] sm:$0xff] %v823_v42  ;;  %v220_v49 = vld [vmem:[%s1147_s30 + $0x290] sm:$0xff] }
  0x85   : > { %598 = vst [vmem:[%s1159_s17 + $0x260] sm:$0xff] %v824_v43  ;;  %599 = vst [vmem:[%s1159_s17 + $0x268] sm:$0xff] %v825_v44  ;;  %v221_v50 = vld [vmem:[%s1147_s30 + $0x298] sm:$0xff]  ;;  %v826_v51 = vadd.f32 -3.1415927, %v344_v45  ;;  %v222_v57 = vld [vmem:[%s1147_s30 + $0x2a0] sm:$0xff] }
  0x86   : > { %v827_v52 = vadd.f32 -3.1415927, %v345_v46  ;;  %v828_v53 = vadd.f32 -3.1415927, %v346_v47  ;;  %v347_v54 = vmul.f32 0.017453292, %v219_v48 }
  0x87   : > { %v348_v55 = vmul.f32 0.017453292, %v220_v49  ;;  %v349_v56 = vmul.f32 0.017453292, %v221_v50  ;;  %600 = vst [vmem:[%s1159_s17 + $0x270] sm:$0xff] %v826_v51  ;;  %v223_v58 = vld [vmem:[%s1147_s30 + $0x2a8] sm:$0xff] }
  0x88   : > { %601 = vst [vmem:[%s1159_s17 + $0x278] sm:$0xff] %v827_v52  ;;  %602 = vst [vmem:[%s1159_s17 + $0x280] sm:$0xff] %v828_v53  ;;  %v224_v59 = vld [vmem:[%s1147_s30 + $0x2b0] sm:$0xff]  ;;  %v829_v60 = vadd.f32 -3.1415927, %v347_v54  ;;  %v225_v2 = vld [vmem:[%s1147_s30 + $0x2b8] sm:$0xff] }
  0x89   : > { %v830_v61 = vadd.f32 -3.1415927, %v348_v55  ;;  %v831_v62 = vadd.f32 -3.1415927, %v349_v56  ;;  %v350_v63 = vmul.f32 0.017453292, %v222_v57 }
  0x8a   : > { %v351_v0 = vmul.f32 0.017453292, %v223_v58  ;;  %v352_v1 = vmul.f32 0.017453292, %v224_v59  ;;  %603 = vst [vmem:[%s1159_s17 + $0x288] sm:$0xff] %v829_v60  ;;  %v226_v3 = vld [vmem:[%s1147_s30 + $0x2c0] sm:$0xff] }
  0x8b   : > { %604 = vst [vmem:[%s1159_s17 + $0x290] sm:$0xff] %v830_v61  ;;  %605 = vst [vmem:[%s1159_s17 + $0x298] sm:$0xff] %v831_v62  ;;  %v227_v4 = vld [vmem:[%s1147_s30 + $0x2c8] sm:$0xff]  ;;  %v832_v5 = vadd.f32 -3.1415927, %v350_v63  ;;  %v228_v11 = vld [vmem:[%s1147_s30 + $0x2d0] sm:$0xff] }
  0x8c   : > { %v833_v6 = vadd.f32 -3.1415927, %v351_v0  ;;  %v834_v7 = vadd.f32 -3.1415927, %v352_v1  ;;  %v353_v8 = vmul.f32 0.017453292, %v225_v2 }
  0x8d   : > { %v354_v9 = vmul.f32 0.017453292, %v226_v3  ;;  %v355_v10 = vmul.f32 0.017453292, %v227_v4  ;;  %606 = vst [vmem:[%s1159_s17 + $0x2a0] sm:$0xff] %v832_v5  ;;  %v229_v12 = vld [vmem:[%s1147_s30 + $0x2d8] sm:$0xff] }
  0x8e   : > { %607 = vst [vmem:[%s1159_s17 + $0x2a8] sm:$0xff] %v833_v6  ;;  %608 = vst [vmem:[%s1159_s17 + $0x2b0] sm:$0xff] %v834_v7  ;;  %v230_v13 = vld [vmem:[%s1147_s30 + $0x2e0] sm:$0xff]  ;;  %v835_v14 = vadd.f32 -3.1415927, %v353_v8  ;;  %v231_v20 = vld [vmem:[%s1147_s30 + $0x2e8] sm:$0xff] }
  0x8f   : > { %v836_v15 = vadd.f32 -3.1415927, %v354_v9  ;;  %v837_v16 = vadd.f32 -3.1415927, %v355_v10  ;;  %v356_v17 = vmul.f32 0.017453292, %v228_v11 }
  0x90   : > { %v357_v18 = vmul.f32 0.017453292, %v229_v12  ;;  %v358_v19 = vmul.f32 0.017453292, %v230_v13  ;;  %609 = vst [vmem:[%s1159_s17 + $0x2b8] sm:$0xff] %v835_v14  ;;  %v232_v21 = vld [vmem:[%s1147_s30 + $0x2f0] sm:$0xff] }
  0x91   : > { %610 = vst [vmem:[%s1159_s17 + $0x2c0] sm:$0xff] %v836_v15  ;;  %611 = vst [vmem:[%s1159_s17 + $0x2c8] sm:$0xff] %v837_v16  ;;  %v233_v22 = vld [vmem:[%s1147_s30 + $0x2f8] sm:$0xff]  ;;  %v838_v23 = vadd.f32 -3.1415927, %v356_v17  ;;  %v234_v29 = vld [vmem:[%s1147_s30 + $0x300] sm:$0xff] }
  0x92   : > { %v839_v24 = vadd.f32 -3.1415927, %v357_v18  ;;  %v840_v25 = vadd.f32 -3.1415927, %v358_v19  ;;  %v359_v26 = vmul.f32 0.017453292, %v231_v20 }
  0x93   : > { %v360_v27 = vmul.f32 0.017453292, %v232_v21  ;;  %v361_v28 = vmul.f32 0.017453292, %v233_v22  ;;  %612 = vst [vmem:[%s1159_s17 + $0x2d0] sm:$0xff] %v838_v23  ;;  %v235_v30 = vld [vmem:[%s1147_s30 + $0x308] sm:$0xff] }
  0x94   : > { %613 = vst [vmem:[%s1159_s17 + $0x2d8] sm:$0xff] %v839_v24  ;;  %614 = vst [vmem:[%s1159_s17 + $0x2e0] sm:$0xff] %v840_v25  ;;  %v236_v31 = vld [vmem:[%s1147_s30 + $0x310] sm:$0xff]  ;;  %v841_v32 = vadd.f32 -3.1415927, %v359_v26  ;;  %v237_v38 = vld [vmem:[%s1147_s30 + $0x318] sm:$0xff] }
  0x95   : > { %v842_v33 = vadd.f32 -3.1415927, %v360_v27  ;;  %v843_v34 = vadd.f32 -3.1415927, %v361_v28  ;;  %v362_v35 = vmul.f32 0.017453292, %v234_v29 }
  0x96   : > { %v363_v36 = vmul.f32 0.017453292, %v235_v30  ;;  %v364_v37 = vmul.f32 0.017453292, %v236_v31  ;;  %615 = vst [vmem:[%s1159_s17 + $0x2e8] sm:$0xff] %v841_v32  ;;  %v238_v39 = vld [vmem:[%s1147_s30 + $0x320] sm:$0xff] }
  0x97   : > { %616 = vst [vmem:[%s1159_s17 + $0x2f0] sm:$0xff] %v842_v33  ;;  %617 = vst [vmem:[%s1159_s17 + $0x2f8] sm:$0xff] %v843_v34  ;;  %v239_v40 = vld [vmem:[%s1147_s30 + $0x328] sm:$0xff]  ;;  %v844_v41 = vadd.f32 -3.1415927, %v362_v35  ;;  %v240_v47 = vld [vmem:[%s1147_s30 + $0x330] sm:$0xff] }
  0x98   : > { %v845_v42 = vadd.f32 -3.1415927, %v363_v36  ;;  %v846_v43 = vadd.f32 -3.1415927, %v364_v37  ;;  %v365_v44 = vmul.f32 0.017453292, %v237_v38 }
  0x99   : > { %v366_v45 = vmul.f32 0.017453292, %v238_v39  ;;  %v367_v46 = vmul.f32 0.017453292, %v239_v40  ;;  %618 = vst [vmem:[%s1159_s17 + $0x300] sm:$0xff] %v844_v41  ;;  %v241_v48 = vld [vmem:[%s1147_s30 + $0x338] sm:$0xff] }
  0x9a   : > { %619 = vst [vmem:[%s1159_s17 + $0x308] sm:$0xff] %v845_v42  ;;  %620 = vst [vmem:[%s1159_s17 + $0x310] sm:$0xff] %v846_v43  ;;  %v242_v49 = vld [vmem:[%s1147_s30 + $0x340] sm:$0xff]  ;;  %v847_v50 = vadd.f32 -3.1415927, %v365_v44  ;;  %v243_v56 = vld [vmem:[%s1147_s30 + $0x348] sm:$0xff] }
  0x9b   : > { %v848_v51 = vadd.f32 -3.1415927, %v366_v45  ;;  %v849_v52 = vadd.f32 -3.1415927, %v367_v46  ;;  %v368_v53 = vmul.f32 0.017453292, %v240_v47 }
  0x9c   : > { %v369_v54 = vmul.f32 0.017453292, %v241_v48  ;;  %v370_v55 = vmul.f32 0.017453292, %v242_v49  ;;  %621 = vst [vmem:[%s1159_s17 + $0x318] sm:$0xff] %v847_v50  ;;  %v244_v57 = vld [vmem:[%s1147_s30 + $0x350] sm:$0xff] }
  0x9d   : > { %622 = vst [vmem:[%s1159_s17 + $0x320] sm:$0xff] %v848_v51  ;;  %623 = vst [vmem:[%s1159_s17 + $0x328] sm:$0xff] %v849_v52  ;;  %v245_v58 = vld [vmem:[%s1147_s30 + $0x358] sm:$0xff]  ;;  %v850_v59 = vadd.f32 -3.1415927, %v368_v53  ;;  %v246_v1 = vld [vmem:[%s1147_s30 + $0x360] sm:$0xff] }
  0x9e   : > { %v851_v60 = vadd.f32 -3.1415927, %v369_v54  ;;  %v852_v61 = vadd.f32 -3.1415927, %v370_v55  ;;  %v371_v62 = vmul.f32 0.017453292, %v243_v56 }
  0x9f   : > { %v372_v63 = vmul.f32 0.017453292, %v244_v57  ;;  %v373_v0 = vmul.f32 0.017453292, %v245_v58  ;;  %624 = vst [vmem:[%s1159_s17 + $0x330] sm:$0xff] %v850_v59  ;;  %v247_v2 = vld [vmem:[%s1147_s30 + $0x368] sm:$0xff] }
  0xa0   : > { %625 = vst [vmem:[%s1159_s17 + $0x338] sm:$0xff] %v851_v60  ;;  %626 = vst [vmem:[%s1159_s17 + $0x340] sm:$0xff] %v852_v61  ;;  %v248_v3 = vld [vmem:[%s1147_s30 + $0x370] sm:$0xff]  ;;  %v853_v4 = vadd.f32 -3.1415927, %v371_v62  ;;  %v249_v10 = vld [vmem:[%s1147_s30 + $0x378] sm:$0xff] }
  0xa1   : > { %v854_v5 = vadd.f32 -3.1415927, %v372_v63  ;;  %v855_v6 = vadd.f32 -3.1415927, %v373_v0  ;;  %v374_v7 = vmul.f32 0.017453292, %v246_v1 }
  0xa2   : > { %v375_v8 = vmul.f32 0.017453292, %v247_v2  ;;  %v376_v9 = vmul.f32 0.017453292, %v248_v3  ;;  %627 = vst [vmem:[%s1159_s17 + $0x348] sm:$0xff] %v853_v4  ;;  %v250_v11 = vld [vmem:[%s1147_s30 + $0x380] sm:$0xff] }
  0xa3   : > { %628 = vst [vmem:[%s1159_s17 + $0x350] sm:$0xff] %v854_v5  ;;  %629 = vst [vmem:[%s1159_s17 + $0x358] sm:$0xff] %v855_v6  ;;  %v251_v12 = vld [vmem:[%s1147_s30 + $0x388] sm:$0xff]  ;;  %v856_v13 = vadd.f32 -3.1415927, %v374_v7  ;;  %v252_v19 = vld [vmem:[%s1147_s30 + $0x390] sm:$0xff] }
  0xa4   : > { %v857_v14 = vadd.f32 -3.1415927, %v375_v8  ;;  %v858_v15 = vadd.f32 -3.1415927, %v376_v9  ;;  %v377_v16 = vmul.f32 0.017453292, %v249_v10 }
  0xa5   : > { %v378_v17 = vmul.f32 0.017453292, %v250_v11  ;;  %v379_v18 = vmul.f32 0.017453292, %v251_v12  ;;  %630 = vst [vmem:[%s1159_s17 + $0x360] sm:$0xff] %v856_v13  ;;  %v253_v20 = vld [vmem:[%s1147_s30 + $0x398] sm:$0xff] }
  0xa6   : > { %631 = vst [vmem:[%s1159_s17 + $0x368] sm:$0xff] %v857_v14  ;;  %632 = vst [vmem:[%s1159_s17 + $0x370] sm:$0xff] %v858_v15  ;;  %v254_v21 = vld [vmem:[%s1147_s30 + $0x3a0] sm:$0xff]  ;;  %v859_v22 = vadd.f32 -3.1415927, %v377_v16  ;;  %v255_v28 = vld [vmem:[%s1147_s30 + $0x3a8] sm:$0xff] }
  0xa7   : > { %v860_v23 = vadd.f32 -3.1415927, %v378_v17  ;;  %v861_v24 = vadd.f32 -3.1415927, %v379_v18  ;;  %v380_v25 = vmul.f32 0.017453292, %v252_v19 }
  0xa8   : > { %v381_v26 = vmul.f32 0.017453292, %v253_v20  ;;  %v382_v27 = vmul.f32 0.017453292, %v254_v21  ;;  %633 = vst [vmem:[%s1159_s17 + $0x378] sm:$0xff] %v859_v22  ;;  %v256_v29 = vld [vmem:[%s1147_s30 + $0x3b0] sm:$0xff] }
  0xa9   : > { %634 = vst [vmem:[%s1159_s17 + $0x380] sm:$0xff] %v860_v23  ;;  %635 = vst [vmem:[%s1159_s17 + $0x388] sm:$0xff] %v861_v24  ;;  %v257_v30 = vld [vmem:[%s1147_s30 + $0x3b8] sm:$0xff]  ;;  %v862_v31 = vadd.f32 -3.1415927, %v380_v25  ;;  %v258_v37 = vld [vmem:[%s1147_s30 + $0x3c0] sm:$0xff] }
  0xaa   : > { %v863_v32 = vadd.f32 -3.1415927, %v381_v26  ;;  %v864_v33 = vadd.f32 -3.1415927, %v382_v27  ;;  %v383_v34 = vmul.f32 0.017453292, %v255_v28 }
  0xab   : > { %v384_v35 = vmul.f32 0.017453292, %v256_v29  ;;  %v385_v36 = vmul.f32 0.017453292, %v257_v30  ;;  %636 = vst [vmem:[%s1159_s17 + $0x390] sm:$0xff] %v862_v31  ;;  %v259_v38 = vld [vmem:[%s1147_s30 + $0x3c8] sm:$0xff] }
  0xac   : > { %637 = vst [vmem:[%s1159_s17 + $0x398] sm:$0xff] %v863_v32  ;;  %638 = vst [vmem:[%s1159_s17 + $0x3a0] sm:$0xff] %v864_v33  ;;  %v260_v39 = vld [vmem:[%s1147_s30 + $0x3d0] sm:$0xff]  ;;  %v865_v40 = vadd.f32 -3.1415927, %v383_v34  ;;  %v261_v46 = vld [vmem:[%s1147_s30 + $0x3d8] sm:$0xff] }
  0xad   : > { %v866_v41 = vadd.f32 -3.1415927, %v384_v35  ;;  %v867_v42 = vadd.f32 -3.1415927, %v385_v36  ;;  %v386_v43 = vmul.f32 0.017453292, %v258_v37 }
  0xae   : > { %v387_v44 = vmul.f32 0.017453292, %v259_v38  ;;  %v388_v45 = vmul.f32 0.017453292, %v260_v39  ;;  %639 = vst [vmem:[%s1159_s17 + $0x3a8] sm:$0xff] %v865_v40  ;;  %v262_v47 = vld [vmem:[%s1147_s30 + $0x3e0] sm:$0xff] }
  0xaf   : > { %640 = vst [vmem:[%s1159_s17 + $0x3b0] sm:$0xff] %v866_v41  ;;  %641 = vst [vmem:[%s1159_s17 + $0x3b8] sm:$0xff] %v867_v42  ;;  %v263_v48 = vld [vmem:[%s1147_s30 + $0x3e8] sm:$0xff]  ;;  %v868_v49 = vadd.f32 -3.1415927, %v386_v43  ;;  %v264_v55 = vld [vmem:[%s1147_s30 + $0x3f0] sm:$0xff] }
  0xb0   : > { %v869_v50 = vadd.f32 -3.1415927, %v387_v44  ;;  %v870_v51 = vadd.f32 -3.1415927, %v388_v45  ;;  %v389_v52 = vmul.f32 0.017453292, %v261_v46 }
  0xb1   : > { %v390_v53 = vmul.f32 0.017453292, %v262_v47  ;;  %v391_v54 = vmul.f32 0.017453292, %v263_v48  ;;  %642 = vst [vmem:[%s1159_s17 + $0x3c0] sm:$0xff] %v868_v49  ;;  %v265_v56 = vld [vmem:[%s1147_s30 + $0x3f8] sm:$0xff] }
  0xb2   : > { %643 = vst [vmem:[%s1159_s17 + $0x3c8] sm:$0xff] %v869_v50  ;;  %644 = vst [vmem:[%s1159_s17 + $0x3d0] sm:$0xff] %v870_v51  ;;  %s665_s27 = sshll.u32 %s1159_s17, 4  ;;  %v871_v57 = vadd.f32 -3.1415927, %v389_v52  ;;  %s651_s2 = scalar_lea.sflag [#allocation4], %s1143_s23  ;;  %s1416_s27 = int_to_ptr.vmem [resolvable:$true] %s665_s27 }
  0xb3   : > { %v872_v58 = vadd.f32 -3.1415927, %v390_v53  ;;  %v873_v59 = vadd.f32 -3.1415927, %v391_v54  ;;  %v392_v60 = vmul.f32 0.017453292, %v264_v55 }
  0xb4   : > { %v393_v61 = vmul.f32 0.017453292, %v265_v56  ;;  %645 = vst [vmem:[%s1159_s17 + $0x3d8] sm:$0xff] %v871_v57  ;;  %s964_s3 = scalar_lea.vmem %s1416_s27, 16384  ;;  %p1471_p12 = scmp.ne.s32.totalorder %s1467_s18, 0 }
  0xb5   : > { %646 = vst [vmem:[%s1159_s17 + $0x3e0] sm:$0xff] %v872_v58  ;;  %647 = vst [vmem:[%s1159_s17 + $0x3e8] sm:$0xff] %v873_v59  ;;  %v874_v62 = vadd.f32 -3.1415927, %v392_v60  ;;  %p965_p11 = scmp.ne.s32.totalorder %s1416_s27, %s964_s3  ;;  %s1033_s4 = smov [#allocation5]  }
  0xb6   : > { %v875_v63 = vadd.f32 -3.1415927, %v393_v61  ;;  %s968_s5 = sshll.u32 %s1033_s4, 4  ;;  %s969_s5 = int_to_ptr.vmem [resolvable:$false] %s968_s5 }
  0xb7   : > { %648 = vst [vmem:[%s1159_s17 + $0x3f0] sm:$0xff] %v874_v62  ;;  %p966_p13 = pnand %p965_p11, %p1471_p12  ;;  %s970_s11 = scalar_lea.vmem %s969_s5, 32768 }
  0xb8   : > { %649 = vst [vmem:[%s1159_s17 + $0x3f8] sm:$0xff] %v875_v63  ;;  %p971_p5 = scmp.lt.s32.totalorder %s1416_s27, %s969_s5  ;;  %p972_p7 = scmp.lt.s32.totalorder %s970_s11, %s964_s3 }
  0xb9   : > { %p967_p4 = pneg %p966_p13 }
  0xba   : > { %p973_p8 = por %p972_p7, %p971_p5 }
  0xbc   : > { %p974_p10 = pnand %p973_p8, %p967_p4 }
  0xbe   : > { %977 = shalt.err (!%p974_p10)
}
  0xbf   : > { %s978_s13 = scalar_lea.hbm %s1411_s29, 16384  ;;  %s982_s20 = scalar_lea.hbm %s1462_s1, 32768 }
  0xc0   : > { %p979_p0 = scmp.ne.s32.totalorder %s1411_s29, %s978_s13  ;;  %p983_p1 = scmp.lt.s32.totalorder %s1411_s29, %s1462_s1 }
  0xc1   : > { %p984_p3 = scmp.lt.s32.totalorder %s982_s20, %s978_s13 }
  0xc2   : > { %p980_p2 = pnand %p979_p0, %p1471_p12 }
  0xc3   : > { %p985_p6 = por %p984_p3, %p983_p1 }
  0xc4   : > { %p981_p9 = pneg %p980_p2 }
  0xc6   : > { %p986_p11 = pnand %p985_p6, %p981_p9 }
  0xc8   : > { %989 = shalt.err (!%p986_p11)
}
  0xc9   : > { %s1034_s24 = smov 1024   ;;  %s1035_s26 = smov 64  }
  0xca   : > { %888 = dma.vmem_to_hbm [thread:$0]  (%p1471_p12), %s1416_s27, 16384, %s1411_s29, %s651_s2, %s1034_s24, %s1034_s24, %s1035_s26  }
  0xcb PF: > { %s680_s30 = sand.u32 1, %s1016_s6   ;;  %p1472_p13 = scmp.ne.s32.totalorder %s1468_s19, 0 }
  0xcc   : > { %p1473_p4 = scmp.ge.s32.totalorder %s1028_s9, 2  ;;  %s681_s17 = scalar_lea.sflag [#allocation4], %s680_s30 }
  0xce   : > { %p895_p5 = pnand %p1473_p4, %p1472_p13 }
  0xd0   : > { %p896_p7 = pneg %p895_p5 }
  0xd2   : > { %1011 = dma.done.wait (%p896_p7), %s681_s17, 16384  }
  0xd3   : > { %1013 = vsyncadd (%p896_p7), %s681_s17, 4294950912  ;;  %p14_p8 = scmp.ge.s32.totalorder %s1071_s12, 4   ;;  %s1474_s6 = smov %s1020_s7 }
  0xd4   : > { %s1475_s7 = smov %s1024_s8  ;;  %s1476_s8 = smov %s1083_s15 }
  0xd5   : > { %s1477_s9 = smov %s1071_s12  ;;  %16 = sbr.rel (!%p14_p8) target bundleno = 5 (0x5), region = 69 }
  0xda   :  { %686 = vsyncpa [#allocation3], 1 }
  0xdb   :  { %688 = vsyncpa [#allocation3 + $0x1], 1 }
  0xdc   :  { %689 = vsyncpa [#allocation4], 1 }
  0xdd   :  { %691 = vsyncpa [#allocation4 + $0x1], 1 }

</bundles_post_ra>
